<compile_context>
chip_gen: v5e
topology: v5e:2x2
jax: 0.10.0
libtpu: 0.0.40
codegen_flags: <defaults>
</compile_context>

<pallas_src>
import functools

import jax
import jax.numpy as jnp
from jax.experimental import pallas as pl
from jax.experimental.pallas import tpu as pltpu

X_DIM = 32          # config.gcn.X_dim
ACTION_DIM = 2      # action_dim
ROBOT_FEAT = 5      # ndata['h'][:, 4:9]
WR_HIDDEN = 64      # graph-model node-embedding MLP hidden width
SCORE_HIDDEN = 256  # score_network hidden width
MAX_BLOCK_B = 512   # batch tile (rows per grid step); activations ~1 MB at 512


def _round_up(x, m):
    return ((x + m - 1) // m) * m


def _critic_kernel(rs_ref, act_ref,
                   wr1_ref, br1_ref, wr2_ref, br2_ref,
                   wg1_ref, wg2_ref,
                   w1s_ref, w1a_ref, b1_ref,
                   w2_ref, b2_ref,
                   w3r_ref, b3_ref,
                   q_ref):
    f32 = jnp.float32
    bf16 = jnp.bfloat16
    rs = rs_ref[...]      # (BM, 5)  bf16
    act = act_ref[...]    # (BM, A)  bf16

    # ---- graph model: node-embedding MLP (5 -> 64 -> X_dim), ReLU ----
    h = jnp.maximum(jnp.dot(rs, wr1_ref[...], preferred_element_type=f32)
                    + br1_ref[...], 0.0)
    x = jnp.maximum(jnp.dot(h.astype(bf16), wr2_ref[...], preferred_element_type=f32)
                    + br2_ref[...], 0.0)

    # ---- GCN layers: single (robot-only) node per graph => normalized
    #      adjacency is the 1x1 identity, so each layer is relu(X @ W) ----
    x = jnp.maximum(jnp.dot(x.astype(bf16), wg1_ref[...],
                            preferred_element_type=f32), 0.0)
    emb = jnp.maximum(jnp.dot(x.astype(bf16), wg2_ref[...],
                              preferred_element_type=f32), 0.0)

    # ---- score network on sa = concat([emb, action], axis=1) ----
    # concat(emb, act) @ W1  ==  emb @ W1[:X_dim] + act @ W1[X_dim:]
    h1 = jnp.maximum(
        jnp.dot(emb.astype(bf16), w1s_ref[...], preferred_element_type=f32)
        + jnp.dot(act, w1a_ref[...], preferred_element_type=f32)
        + b1_ref[...], 0.0)
    h2 = jnp.maximum(jnp.dot(h1.astype(bf16), w2_ref[...],
                             preferred_element_type=f32) + b2_ref[...], 0.0)

    # ---- final Linear(256 -> 1): VPU multiply + lane reduce (no N=1 MXU matmul) ----
    q_ref[...] = jnp.sum(h2 * w3r_ref[...], axis=-1, keepdims=True) + b3_ref[...]


def critic_q(robot_state, action, graph_params, score_params):
    """One Q-head: graph_model(robot_state)[:,0,:] -> cat(action) -> mlp([256,256,1])."""
    B = robot_state.shape[0]
    # Tile rows; keep the tile a multiple of 16 (bf16 sublane packing).  When the
    # batch is small the tile equals the (padded) batch, so block == full array.
    bm = min(MAX_BLOCK_B, _round_up(B, 16))
    b_pad = _round_up(B, bm)

    rs = jnp.pad(robot_state.astype(jnp.bfloat16), ((0, b_pad - B), (0, 0)))
    act = jnp.pad(action.astype(jnp.bfloat16), ((0, b_pad - B), (0, 0)))
    weights = (*graph_params, *score_params)

    batch_spec = lambda f: pl.BlockSpec((bm, f), lambda i: (i, 0))
    resident = lambda w: pl.BlockSpec(w.shape, lambda i: (0, 0))  # stays in VMEM

    flops = 2 * b_pad * (ROBOT_FEAT * WR_HIDDEN + WR_HIDDEN * X_DIM
                         + 2 * X_DIM * X_DIM
                         + (X_DIM + ACTION_DIM) * SCORE_HIDDEN
                         + SCORE_HIDDEN * SCORE_HIDDEN + SCORE_HIDDEN)
    bytes_accessed = (sum(int(w.size) * w.dtype.itemsize for w in weights)
                      + int(rs.size) * 2 + int(act.size) * 2 + b_pad * 4)

    q = pl.pallas_call(
        _critic_kernel,
        out_shape=jax.ShapeDtypeStruct((b_pad, 1), jnp.float32),
        grid=(b_pad // bm,),
        in_specs=[batch_spec(rs.shape[1]), batch_spec(act.shape[1])]
                 + [resident(w) for w in weights],
        out_specs=pl.BlockSpec((bm, 1), lambda i: (i, 0)),
        compiler_params=pltpu.CompilerParams(
            dimension_semantics=("parallel",)),
        cost_estimate=pl.CostEstimate(flops=int(flops), transcendentals=0,
                                      bytes_accessed=int(bytes_accessed)),
    )(rs, act, *weights)
    return q[:B]


def _init_params(key):
    ks = jax.random.split(key, 16)

    def n(k, shp, dtype, scale=0.1):
        return (scale * jax.random.normal(k, shp)).astype(dtype)

    bf16, f32 = jnp.bfloat16, jnp.float32
    # graph model (graph_model1 is graph_model2 in the reference __init__)
    graph = (
        n(ks[0], (ROBOT_FEAT, WR_HIDDEN), bf16),    # wr1
        n(ks[1], (1, WR_HIDDEN), f32),              # br1
        n(ks[2], (WR_HIDDEN, X_DIM), bf16),         # wr2
        n(ks[3], (1, X_DIM), f32),                  # br2
        n(ks[4], (X_DIM, X_DIM), bf16),             # wg1 (GCN layer 1)
        n(ks[5], (X_DIM, X_DIM), bf16),             # wg2 (GCN layer 2)
    )

    def score_net(k):
        kk = jax.random.split(k, 6)
        return (
            n(kk[0], (X_DIM, SCORE_HIDDEN), bf16),        # w1 rows: state embedding
            n(kk[1], (ACTION_DIM, SCORE_HIDDEN), bf16),   # w1 rows: action
            n(kk[2], (1, SCORE_HIDDEN), f32),             # b1
            n(kk[3], (SCORE_HIDDEN, SCORE_HIDDEN), bf16), # w2
            n(kk[4], (1, SCORE_HIDDEN), f32),             # b2
            n(kk[5], (1, SCORE_HIDDEN), f32),             # w3 stored as a row (transposed)
            jnp.zeros((1, 1), f32),                       # b3
        )

    score1 = score_net(ks[6])
    score2 = score_net(ks[7])   # defined by __init__ (unused by the batched branch)
    return graph, score1, score2


def critic0_forward(node_features, num_nodes_per_graph, action,
                    graph_params, score1_params, score2_params):
    """Batched (`else`) branch of Critic0.forward."""
    # glue: robot node = first node of each graph in the batched DGL graph
    robot_ids = jnp.concatenate(
        [jnp.zeros((1,), jnp.int32),
         jnp.cumsum(jnp.asarray(num_nodes_per_graph, jnp.int32))[:-1]])
    robot_state = node_features[robot_ids, 4:9]          # (B, 5)

    q1 = critic_q(robot_state, action, graph_params, score1_params)
    # The reference batched branch uses graph_model1 + score_network1 for q2 as
    # well, so q2 == q1 exactly; no second kernel launch needed.
    q2 = q1
    # TODO(synk): graph_model2 / score_network2 are only exercised by the
    # batch_size==1 branch of the reference; parameters exist but are unused here.
    del score2_params
    return q1, q2


if __name__ == "__main__":
    key = jax.random.PRNGKey(0)
    k_feat, k_act, k_par = jax.random.split(key, 3)

    num_nodes = [5, 6]                      # 2 graphs in the batch
    total_nodes = sum(num_nodes)
    feat_dim = 9                            # robot node features (slice 4:9 used)

    node_features = jax.random.normal(k_feat, (total_nodes, feat_dim), jnp.float32)
    action = jax.random.normal(k_act, (len(num_nodes), ACTION_DIM), jnp.float32)

    graph_params, score1_params, score2_params = _init_params(k_par)

    q1, q2 = critic0_forward(node_features, num_nodes, action,
                             graph_params, score1_params, score2_params)
    jax.block_until_ready((q1, q2))
    assert q1.shape == (len(num_nodes), 1) and q2.shape == (len(num_nodes), 1)
    print("KERNEL_OK")
</pallas_src>

<mosaic_0001>
module attributes {stable_mosaic.version = 11 : i64} {
  func.func @_critic_kernel(%arg0: i32, %arg1: memref<16x5xbf16, #tpu.memory_space<vmem>>, %arg2: memref<16x2xbf16, #tpu.memory_space<vmem>>, %arg3: memref<5x64xbf16, #tpu.memory_space<vmem>>, %arg4: memref<1x64xf32, #tpu.memory_space<vmem>>, %arg5: memref<64x32xbf16, #tpu.memory_space<vmem>>, %arg6: memref<1x32xf32, #tpu.memory_space<vmem>>, %arg7: memref<32x32xbf16, #tpu.memory_space<vmem>>, %arg8: memref<32x32xbf16, #tpu.memory_space<vmem>>, %arg9: memref<32x256xbf16, #tpu.memory_space<vmem>>, %arg10: memref<2x256xbf16, #tpu.memory_space<vmem>>, %arg11: memref<1x256xf32, #tpu.memory_space<vmem>>, %arg12: memref<256x256xbf16, #tpu.memory_space<vmem>>, %arg13: memref<1x256xf32, #tpu.memory_space<vmem>>, %arg14: memref<1x256xf32, #tpu.memory_space<vmem>>, %arg15: memref<1x1xf32, #tpu.memory_space<vmem>>, %arg16: memref<16x1xf32, #tpu.memory_space<vmem>>) attributes {dimension_semantics = [#tpu.dimension_semantics<parallel>], iteration_bounds = array<i64: 1>, scalar_prefetch = 0 : i64, scratch_operands = 0 : i64, tpu.core_type = #tpu.core_type<tc>, window_params = [{transform_indices = @transform_0, window_bounds = array<i64: 16, 5>}, {transform_indices = @transform_1, window_bounds = array<i64: 16, 2>}, {pipeline_mode = #tpu.pipeline_mode<synchronous>, transform_indices = @transform_2, window_bounds = array<i64: 5, 64>}, {pipeline_mode = #tpu.pipeline_mode<synchronous>, transform_indices = @transform_3, window_bounds = array<i64: 1, 64>}, {pipeline_mode = #tpu.pipeline_mode<synchronous>, transform_indices = @transform_4, window_bounds = array<i64: 64, 32>}, {pipeline_mode = #tpu.pipeline_mode<synchronous>, transform_indices = @transform_5, window_bounds = array<i64: 1, 32>}, {pipeline_mode = #tpu.pipeline_mode<synchronous>, transform_indices = @transform_6, window_bounds = array<i64: 32, 32>}, {pipeline_mode = #tpu.pipeline_mode<synchronous>, transform_indices = @transform_7, window_bounds = array<i64: 32, 32>}, {pipeline_mode = #tpu.pipeline_mode<synchronous>, transform_indices = @transform_8, window_bounds = array<i64: 32, 256>}, {pipeline_mode = #tpu.pipeline_mode<synchronous>, transform_indices = @transform_9, window_bounds = array<i64: 2, 256>}, {pipeline_mode = #tpu.pipeline_mode<synchronous>, transform_indices = @transform_10, window_bounds = array<i64: 1, 256>}, {pipeline_mode = #tpu.pipeline_mode<synchronous>, transform_indices = @transform_11, window_bounds = array<i64: 256, 256>}, {pipeline_mode = #tpu.pipeline_mode<synchronous>, transform_indices = @transform_12, window_bounds = array<i64: 1, 256>}, {pipeline_mode = #tpu.pipeline_mode<synchronous>, transform_indices = @transform_13, window_bounds = array<i64: 1, 256>}, {pipeline_mode = #tpu.pipeline_mode<synchronous>, transform_indices = @transform_14, window_bounds = array<i64: 1, 1>}, {transform_indices = @transform_15, window_bounds = array<i64: 16, 1>}]} {
    %c0 = arith.constant 0 : index
    %c0_0 = arith.constant 0 : index
    %0 = vector.load %arg1[%c0, %c0_0] : memref<16x5xbf16, #tpu.memory_space<vmem>>, vector<16x5xbf16>
    %c0_1 = arith.constant 0 : index
    %c0_2 = arith.constant 0 : index
    %1 = vector.load %arg2[%c0_1, %c0_2] : memref<16x2xbf16, #tpu.memory_space<vmem>>, vector<16x2xbf16>
    %c0_3 = arith.constant 0 : index
    %c0_4 = arith.constant 0 : index
    %2 = vector.load %arg3[%c0_3, %c0_4] : memref<5x64xbf16, #tpu.memory_space<vmem>>, vector<5x64xbf16>
    %cst = arith.constant dense<0.000000e+00> : vector<16x64xf32>
    %3 = tpu.matmul %0, %2, %cst {dimension_numbers = #tpu.dot_dimension_numbers<[1], [0], [0], [1], [0, 0, 1, 1], [], []>} : vector<16x5xbf16>, vector<5x64xbf16>, vector<16x64xf32> -> vector<16x64xf32>
    %c0_5 = arith.constant 0 : index
    %c0_6 = arith.constant 0 : index
    %4 = vector.load %arg4[%c0_5, %c0_6] : memref<1x64xf32, #tpu.memory_space<vmem>>, vector<1x64xf32>
    %5 = vector.broadcast %4 : vector<1x64xf32> to vector<16x64xf32>
    %6 = arith.addf %3, %5 : vector<16x64xf32>
    %cst_7 = arith.constant 0.000000e+00 : f32
    %7 = vector.broadcast %cst_7 : f32 to vector<16x64xf32>
    %8 = arith.maximumf %6, %7 : vector<16x64xf32>
    %9 = arith.truncf %8 : vector<16x64xf32> to vector<16x64xbf16>
    %c0_8 = arith.constant 0 : index
    %c0_9 = arith.constant 0 : index
    %10 = vector.load %arg5[%c0_8, %c0_9] : memref<64x32xbf16, #tpu.memory_space<vmem>>, vector<64x32xbf16>
    %cst_10 = arith.constant dense<0.000000e+00> : vector<16x32xf32>
    %11 = tpu.matmul %9, %10, %cst_10 {dimension_numbers = #tpu.dot_dimension_numbers<[1], [0], [0], [1], [0, 0, 1, 1], [], []>} : vector<16x64xbf16>, vector<64x32xbf16>, vector<16x32xf32> -> vector<16x32xf32>
    %c0_11 = arith.constant 0 : index
    %c0_12 = arith.constant 0 : index
    %12 = vector.load %arg6[%c0_11, %c0_12] : memref<1x32xf32, #tpu.memory_space<vmem>>, vector<1x32xf32>
    %13 = vector.broadcast %12 : vector<1x32xf32> to vector<16x32xf32>
    %14 = arith.addf %11, %13 : vector<16x32xf32>
    %cst_13 = arith.constant 0.000000e+00 : f32
    %15 = vector.broadcast %cst_13 : f32 to vector<16x32xf32>
    %16 = arith.maximumf %14, %15 : vector<16x32xf32>
    %17 = arith.truncf %16 : vector<16x32xf32> to vector<16x32xbf16>
    %c0_14 = arith.constant 0 : index
    %c0_15 = arith.constant 0 : index
    %18 = vector.load %arg7[%c0_14, %c0_15] : memref<32x32xbf16, #tpu.memory_space<vmem>>, vector<32x32xbf16>
    %cst_16 = arith.constant dense<0.000000e+00> : vector<16x32xf32>
    %19 = tpu.matmul %17, %18, %cst_16 {dimension_numbers = #tpu.dot_dimension_numbers<[1], [0], [0], [1], [0, 0, 1, 1], [], []>} : vector<16x32xbf16>, vector<32x32xbf16>, vector<16x32xf32> -> vector<16x32xf32>
    %cst_17 = arith.constant 0.000000e+00 : f32
    %20 = vector.broadcast %cst_17 : f32 to vector<16x32xf32>
    %21 = arith.maximumf %19, %20 : vector<16x32xf32>
    %22 = arith.truncf %21 : vector<16x32xf32> to vector<16x32xbf16>
    %c0_18 = arith.constant 0 : index
    %c0_19 = arith.constant 0 : index
    %23 = vector.load %arg8[%c0_18, %c0_19] : memref<32x32xbf16, #tpu.memory_space<vmem>>, vector<32x32xbf16>
    %cst_20 = arith.constant dense<0.000000e+00> : vector<16x32xf32>
    %24 = tpu.matmul %22, %23, %cst_20 {dimension_numbers = #tpu.dot_dimension_numbers<[1], [0], [0], [1], [0, 0, 1, 1], [], []>} : vector<16x32xbf16>, vector<32x32xbf16>, vector<16x32xf32> -> vector<16x32xf32>
    %cst_21 = arith.constant 0.000000e+00 : f32
    %25 = vector.broadcast %cst_21 : f32 to vector<16x32xf32>
    %26 = arith.maximumf %24, %25 : vector<16x32xf32>
    %27 = arith.truncf %26 : vector<16x32xf32> to vector<16x32xbf16>
    %c0_22 = arith.constant 0 : index
    %c0_23 = arith.constant 0 : index
    %28 = vector.load %arg9[%c0_22, %c0_23] : memref<32x256xbf16, #tpu.memory_space<vmem>>, vector<32x256xbf16>
    %cst_24 = arith.constant dense<0.000000e+00> : vector<16x256xf32>
    %29 = tpu.matmul %27, %28, %cst_24 {dimension_numbers = #tpu.dot_dimension_numbers<[1], [0], [0], [1], [0, 0, 1, 1], [], []>} : vector<16x32xbf16>, vector<32x256xbf16>, vector<16x256xf32> -> vector<16x256xf32>
    %c0_25 = arith.constant 0 : index
    %c0_26 = arith.constant 0 : index
    %30 = vector.load %arg10[%c0_25, %c0_26] : memref<2x256xbf16, #tpu.memory_space<vmem>>, vector<2x256xbf16>
    %cst_27 = arith.constant dense<0.000000e+00> : vector<16x256xf32>
    %31 = tpu.matmul %1, %30, %cst_27 {dimension_numbers = #tpu.dot_dimension_numbers<[1], [0], [0], [1], [0, 0, 1, 1], [], []>} : vector<16x2xbf16>, vector<2x256xbf16>, vector<16x256xf32> -> vector<16x256xf32>
    %32 = arith.addf %29, %31 : vector<16x256xf32>
    %c0_28 = arith.constant 0 : index
    %c0_29 = arith.constant 0 : index
    %33 = vector.load %arg11[%c0_28, %c0_29] : memref<1x256xf32, #tpu.memory_space<vmem>>, vector<1x256xf32>
    %34 = vector.broadcast %33 : vector<1x256xf32> to vector<16x256xf32>
    %35 = arith.addf %32, %34 : vector<16x256xf32>
    %cst_30 = arith.constant 0.000000e+00 : f32
    %36 = vector.broadcast %cst_30 : f32 to vector<16x256xf32>
    %37 = arith.maximumf %35, %36 : vector<16x256xf32>
    %38 = arith.truncf %37 : vector<16x256xf32> to vector<16x256xbf16>
    %c0_31 = arith.constant 0 : index
    %c0_32 = arith.constant 0 : index
    %39 = vector.load %arg12[%c0_31, %c0_32] : memref<256x256xbf16, #tpu.memory_space<vmem>>, vector<256x256xbf16>
    %cst_33 = arith.constant dense<0.000000e+00> : vector<16x256xf32>
    %40 = tpu.matmul %38, %39, %cst_33 {dimension_numbers = #tpu.dot_dimension_numbers<[1], [0], [0], [1], [0, 0, 1, 1], [], []>} : vector<16x256xbf16>, vector<256x256xbf16>, vector<16x256xf32> -> vector<16x256xf32>
    %c0_34 = arith.constant 0 : index
    %c0_35 = arith.constant 0 : index
    %41 = vector.load %arg13[%c0_34, %c0_35] : memref<1x256xf32, #tpu.memory_space<vmem>>, vector<1x256xf32>
    %42 = vector.broadcast %41 : vector<1x256xf32> to vector<16x256xf32>
    %43 = arith.addf %40, %42 : vector<16x256xf32>
    %cst_36 = arith.constant 0.000000e+00 : f32
    %44 = vector.broadcast %cst_36 : f32 to vector<16x256xf32>
    %45 = arith.maximumf %43, %44 : vector<16x256xf32>
    %c0_37 = arith.constant 0 : index
    %c0_38 = arith.constant 0 : index
    %46 = vector.load %arg14[%c0_37, %c0_38] : memref<1x256xf32, #tpu.memory_space<vmem>>, vector<1x256xf32>
    %47 = vector.broadcast %46 : vector<1x256xf32> to vector<16x256xf32>
    %48 = arith.mulf %45, %47 : vector<16x256xf32>
    %cst_39 = arith.constant dense<0.000000e+00> : vector<16xf32>
    %49 = vector.multi_reduction <add>, %48, %cst_39 [1] : vector<16x256xf32> to vector<16xf32>
    %50 = vector.shape_cast %49 : vector<16xf32> to vector<16x1xf32>
    %c0_40 = arith.constant 0 : index
    %c0_41 = arith.constant 0 : index
    %51 = vector.load %arg15[%c0_40, %c0_41] : memref<1x1xf32, #tpu.memory_space<vmem>>, vector<1x1xf32>
    %52 = vector.broadcast %51 : vector<1x1xf32> to vector<16x1xf32>
    %53 = arith.addf %50, %52 : vector<16x1xf32>
    %c0_42 = arith.constant 0 : index
    %c0_43 = arith.constant 0 : index
    %54 = vector.load %arg16[%c0_42, %c0_43] : memref<16x1xf32, #tpu.memory_space<vmem>>, vector<16x1xf32>
    tpu.vector_store %arg16[%c0_42, %c0_43], %53 {strides = array<i32>} : memref<16x1xf32, #tpu.memory_space<vmem>>, vector<16x1xf32>,
    return
  }
  func.func @transform_0(%arg0: i32) -> (i32, i32) {
    %c0_i32 = arith.constant 0 : i32
    %c0_i32_0 = arith.constant 0 : i32
    return %arg0, %c0_i32 : i32, i32
  }
  func.func @transform_1(%arg0: i32) -> (i32, i32) {
    %c0_i32 = arith.constant 0 : i32
    %c0_i32_0 = arith.constant 0 : i32
    return %arg0, %c0_i32 : i32, i32
  }
  func.func @transform_2(%arg0: i32) -> (i32, i32) {
    %c0_i32 = arith.constant 0 : i32
    %c0_i32_0 = arith.constant 0 : i32
    %c0_i32_1 = arith.constant 0 : i32
    return %c0_i32, %c0_i32_0 : i32, i32
  }
  func.func @transform_3(%arg0: i32) -> (i32, i32) {
    %c0_i32 = arith.constant 0 : i32
    %c0_i32_0 = arith.constant 0 : i32
    %c0_i32_1 = arith.constant 0 : i32
    return %c0_i32, %c0_i32_0 : i32, i32
  }
  func.func @transform_4(%arg0: i32) -> (i32, i32) {
    %c0_i32 = arith.constant 0 : i32
    %c0_i32_0 = arith.constant 0 : i32
    %c0_i32_1 = arith.constant 0 : i32
    return %c0_i32, %c0_i32_0 : i32, i32
  }
  func.func @transform_5(%arg0: i32) -> (i32, i32) {
    %c0_i32 = arith.constant 0 : i32
    %c0_i32_0 = arith.constant 0 : i32
    %c0_i32_1 = arith.constant 0 : i32
    return %c0_i32, %c0_i32_0 : i32, i32
  }
  func.func @transform_6(%arg0: i32) -> (i32, i32) {
    %c0_i32 = arith.constant 0 : i32
    %c0_i32_0 = arith.constant 0 : i32
    %c0_i32_1 = arith.constant 0 : i32
    return %c0_i32, %c0_i32_0 : i32, i32
  }
  func.func @transform_7(%arg0: i32) -> (i32, i32) {
    %c0_i32 = arith.constant 0 : i32
    %c0_i32_0 = arith.constant 0 : i32
    %c0_i32_1 = arith.constant 0 : i32
    return %c0_i32, %c0_i32_0 : i32, i32
  }
  func.func @transform_8(%arg0: i32) -> (i32, i32) {
    %c0_i32 = arith.constant 0 : i32
    %c0_i32_0 = arith.constant 0 : i32
    %c0_i32_1 = arith.constant 0 : i32
    return %c0_i32, %c0_i32_0 : i32, i32
  }
  func.func @transform_9(%arg0: i32) -> (i32, i32) {
    %c0_i32 = arith.constant 0 : i32
    %c0_i32_0 = arith.constant 0 : i32
    %c0_i32_1 = arith.constant 0 : i32
    return %c0_i32, %c0_i32_0 : i32, i32
  }
  func.func @transform_10(%arg0: i32) -> (i32, i32) {
    %c0_i32 = arith.constant 0 : i32
    %c0_i32_0 = arith.constant 0 : i32
    %c0_i32_1 = arith.constant 0 : i32
    return %c0_i32, %c0_i32_0 : i32, i32
  }
  func.func @transform_11(%arg0: i32) -> (i32, i32) {
    %c0_i32 = arith.constant 0 : i32
    %c0_i32_0 = arith.constant 0 : i32
    %c0_i32_1 = arith.constant 0 : i32
    return %c0_i32, %c0_i32_0 : i32, i32
  }
  func.func @transform_12(%arg0: i32) -> (i32, i32) {
    %c0_i32 = arith.constant 0 : i32
    %c0_i32_0 = arith.constant 0 : i32
    %c0_i32_1 = arith.constant 0 : i32
    return %c0_i32, %c0_i32_0 : i32, i32
  }
  func.func @transform_13(%arg0: i32) -> (i32, i32) {
    %c0_i32 = arith.constant 0 : i32
    %c0_i32_0 = arith.constant 0 : i32
    %c0_i32_1 = arith.constant 0 : i32
    return %c0_i32, %c0_i32_0 : i32, i32
  }
  func.func @transform_14(%arg0: i32) -> (i32, i32) {
    %c0_i32 = arith.constant 0 : i32
    %c0_i32_0 = arith.constant 0 : i32
    %c0_i32_1 = arith.constant 0 : i32
    return %c0_i32, %c0_i32_0 : i32, i32
  }
  func.func @transform_15(%arg0: i32) -> (i32, i32) {
    %c0_i32 = arith.constant 0 : i32
    %c0_i32_0 = arith.constant 0 : i32
    return %arg0, %c0_i32 : i32, i32
  }
}

</mosaic_0001>

<bundles_post_ra>
// kernel: tpu_custom_call.1
= control target key start
LH: loop header
LB: loop body
LE: loop exit
PB: predicated region body
PF: predicated region fallthrough
CT: control target
= control target key end

     0   :  { %s1221_s0 = inlined_call_operand.vmem [shape: bf16[16,5], index: 0, kind: input, shape index: {}]   ;;  %s1222_s1 = inlined_call_operand.vmem [shape: bf16[16,2], index: 1, kind: input, shape index: {}]   ;;  %s1223_s2 = inlined_call_operand.vmem [shape: bf16[5,64], index: 2, kind: input, shape index: {}]   ;;  %s1224_s3 = inlined_call_operand.hbm [shape: f32[1,64], index: 3, kind: input, shape index: {}]   ;;  %s1225_s4 = inlined_call_operand.vmem [shape: bf16[64,32], index: 4, kind: input, shape index: {}]   ;;  %s1226_s5 = inlined_call_operand.hbm [shape: f32[1,32], index: 5, kind: input, shape index: {}]   ;;  %s1227_s6 = inlined_call_operand.vmem [shape: bf16[32,32], index: 6, kind: input, shape index: {}]   ;;  %s1228_s7 = inlined_call_operand.hbm [shape: bf16[32,32], index: 7, kind: input, shape index: {}]   ;;  %s1229_s8 = inlined_call_operand.vmem [shape: bf16[32,256], index: 8, kind: input, shape index: {}]   ;;  %s1230_s9 = inlined_call_operand.vmem [shape: bf16[2,256], index: 9, kind: input, shape index: {}]   ;;  %s1231_s10 = inlined_call_operand.vmem [shape: f32[1,256], index: 10, kind: input, shape index: {}]   ;;  %s1232_s11 = inlined_call_operand.hbm [shape: bf16[256,256], index: 11, kind: input, shape index: {}]   ;;  %s1233_s12 = inlined_call_operand.vmem [shape: f32[1,256], index: 12, kind: input, shape index: {}]   ;;  %s1234_s13 = inlined_call_operand.vmem [shape: f32[1,256], index: 13, kind: input, shape index: {}]   ;;  %s1235_s14 = inlined_call_operand.<no memory space> [shape: f32[1,1], index: 14, kind: input, shape index: {}]   ;;  %s1236_s15 = inlined_call_operand.vmem [shape: f32[16,1], index: 15, kind: output, shape index: {}]  }
   0x1   :  { %v20_v0 = vstv %s1235_s14 }
   0x2   :  { %21 = vst [vmem:[#allocation2] sm:$0x1] %v20_v0 }
   0x3   :  { %22 = vsyncpa [#allocation4], 0 }
   0x4   :  { %23 = vsyncpa [#allocation6], 0  ;;  %s49_s22 = sshll.u32 %s1226_s5, 4  ;;  %s50_s22 = int_to_ptr.hbm [resolvable:$true] %s49_s22 }
   0x5   :  { %24 = vsyncpa [#allocation9], 0  ;;  %s1044_s23 = smov [#allocation5]   ;;  %s36_s27 = sshll.u32 %s1224_s3, 4  ;;  %s37_s27 = int_to_ptr.hbm [resolvable:$true] %s36_s27 }
   0x6   :  { %s51_s24 = sshll.u32 %s1044_s23, 4  ;;  %s1045_s28 = smov [#allocation3]   ;;  %s52_s24 = int_to_ptr.vmem [resolvable:$true] %s51_s24 }
   0x7   :  { %54 = dma.hbm_to_vmem [thread:$0]  %s50_s22, 16, %s52_s24, [#allocation6]  }
   0x8   :  { %s38_s14 = sshll.u32 %s1045_s28, 4  ;;  %s61_s16 = sshll.u32 %s1228_s7, 4  ;;  %s39_s14 = int_to_ptr.vmem [resolvable:$true] %s38_s14  ;;  %s62_s16 = int_to_ptr.hbm [resolvable:$true] %s61_s16 }
   0x9   :  { %41 = dma.hbm_to_vmem [thread:$0]  %s37_s27, 16, %s39_s14, [#allocation4]  }
   0xa   :  { %s1046_s5 = smov [#allocation7]   ;;  %s80_s20 = sshll.u32 %s1232_s11, 4  ;;  %s81_s20 = int_to_ptr.hbm [resolvable:$true] %s80_s20 }
   0xb   :  { %s63_s17 = sshll.u32 %s1046_s5, 4  ;;  %s1047_s21 = smov 64   ;;  %s64_s17 = int_to_ptr.vmem [resolvable:$true] %s63_s17 }
   0xc   :  { %s1048_s3 = smov 4   ;;  %s1049_s22 = smov [#allocation8]  }
   0xd   :  { %69 = dma.hbm_to_vmem [thread:$0]  %s62_s16, 256, %s64_s17, [#allocation6], %s1047_s21, %s1047_s21, %s1048_s3  }
   0xe   :  { %s82_s23 = sshll.u32 %s1049_s22, 4  ;;  %s1050_s24 = smov 128   ;;  %s83_s23 = int_to_ptr.vmem [resolvable:$true] %s82_s23 }
   0xf   :  { %s1051_s25 = smov 8  }
  0x10   :  { %88 = dma.hbm_to_vmem [thread:$0]  %s81_s20, 4096, %s83_s23, [#allocation9], %s1050_s24, %s1050_s24, %s1051_s25  }
  0x11   :  { %1038 = dma.done.wait [#allocation4], 16  }
  0x12   :  { %1039 = vsyncadd [#allocation4], 4294967280 }
  0x13   :  { %1040 = dma.done.wait [#allocation6], 272  }
  0x14   :  { %1041 = vsyncadd [#allocation6], 4294967024 }
  0x15   :  { %1042 = dma.done.wait [#allocation9], 4096  }
  0x16   :  { %1043 = vsyncadd [#allocation9], 4294963200  ;;  %vm130_vm0 = vcmask 1041408   ;;  %vm131_vm1 = vcmask 1042432   ;;  %v1052_v1 = vmov 65535   ;;  %v884_v6 = vld [vmem:[%s1221_s0] sm:$0xff] }
  0x17   :  { %v132_v2 = vsel %vm130_vm0, 4294967295, %v1052_v1  ;;  %v116_v4 = vld [vmem:[%s1223_s2] sm:$0x7]  ;;  %vm126_vm2 = vcmask 39936   ;;  %v889_v7 = vld [vmem:[%s1225_s4 + $0x18] sm:$0xff]  ;;  %v888_v8 = vld [vmem:[%s1225_s4 + $0x10] sm:$0xff] }
  0x18   :  { %v133_v3 = vsel %vm131_vm1, %v132_v2, 0  ;;  %198 = vmatpush.bf16.msra.mxu1 %v889_v7  ;;  %v887_v9 = vld [vmem:[%s1225_s4 + $0x8] sm:$0xff]  ;;  %v886_v10 = vld [vmem:[%s1225_s4] sm:$0xff]  ;;  %vm190_vm3 = vcmask 523264   ;;  %vm227_vm4 = vcmask 261120   ;;  %v893_v29 = vld [vmem:[#allocation7 + $0x8] sm:$0xff] }
  0x19   :  { %v135_v5 = vand.u32 %v133_v3, %v116_v4  ;;  %v939_v12 = vld [vmem:[#allocation3] ss:$0 sm:$0xff]  ;;  %v890_v20 = vld [vmem:[%s1227_s6] sm:$0xff]  ;;  %v940_v22 = vld [vmem:[#allocation5] ss:$0 sm:$0xff]  ;;  %273 = vmatpush.bf16.msra.mxu3 %v893_v29  ;;  %vm302_vm5 = vcmask 1040384  }
  0x1a   :  { %v891_v19 = vld [vmem:[%s1227_s6 + $0x8] sm:$0xff]  ;;  %v748_v31 = vld [vmem:[%s1229_s8 + $0x10] sm:$0xf]  ;;  %v897_v32 = vld [vmem:[%s1229_s8 + $0x14] sm:$0xf0]  ;;  %vm298_vm6 = vcmask 15360  }
  0x1b   :  { %144 = vmatpush.bf16.msra.mxu0 %v135_v5  ;;  %237 = vmatpush.bf16.msra.mxu2 %v891_v19  ;;  %v892_v30 = vld [vmem:[#allocation7] sm:$0xff]  ;;  %v288_v33 = vld [vmem:[%s1230_s9] sm:$0x3]  ;;  %v749_v34 = vor.u32 %v897_v32, %v748_v31  ;;  %v895_v44 = vld [vmem:[%s1229_s8 + $0x4] sm:$0xf0]  ;;  %vm682_vm7 = vcmask 7168  }
  0x1c   :  { %199 = vmatpush.bf16.msra.mxu1 %v888_v8  ;;  %295 = vst [vmem:[#allocation1] ss:$9 sm:$0xff] %v288_v33  ;;  %v740_v43 = vld [vmem:[%s1229_s8] sm:$0xf]  ;;  %v896_v47 = vld [vmem:[%s1229_s8 + $0x14] sm:$0xf] }
  0x1d   :  { %274 = vmatpush.bf16.msra.mxu3 %v892_v30  ;;  %v741_v46 = vor.u32 %v895_v44, %v740_v43  ;;  %v750_v48 = vld [vmem:[%s1229_s8 + $0x18] sm:$0xf0]  ;;  %v885_v49 = vld [vmem:[%s1222_s1] sm:$0xff]  ;;  %v742_v52 = vld [vmem:[%s1229_s8 + $0x8] sm:$0xf0] }
  0x1e   :  { %696 = vmatmul.msk.bf16.vlgmr.msra.gmra.mxu0 %vm126_vm2, %v884_v6  ;;  %v753_v50 = vor.u32 %v896_v47, %v750_v48  ;;  %v894_v51 = vld [vmem:[%s1229_s8 + $0x4] sm:$0xf]  ;;  %v878_v54 = vld [vmem:[#allocation8 + $0xf0] sm:$0xf]  ;;  %v929_v55 = vld [vmem:[#allocation8 + $0xf4] sm:$0xf0] }
  0x1f   :  { %238 = vmatpush.bf16.msra.mxu2 %v890_v20  ;;  %v745_v53 = vor.u32 %v894_v51, %v742_v52  ;;  %v928_v56 = vld [vmem:[#allocation8 + $0xf4] sm:$0xf]  ;;  %v879_v57 = vor.u32 %v929_v55, %v878_v54  ;;  %v880_v58 = vld [vmem:[#allocation8 + $0xf8] sm:$0xf0]  ;;  %v870_v59 = vld [vmem:[#allocation8 + $0xe0] sm:$0xf] }
  0x20   :  { %200 = vmatpush.bf16.msra.mxu1 %v887_v9  ;;  %v927_v60 = vld [vmem:[#allocation8 + $0xe4] sm:$0xf0]  ;;  %v883_v61 = vor.u32 %v928_v56, %v880_v58  ;;  %v926_v62 = vld [vmem:[#allocation8 + $0xe4] sm:$0xf]  ;;  %v872_v63 = vld [vmem:[#allocation8 + $0xe8] sm:$0xf0] }
  0x21   :  { %364 = vmatpush.bf16.msrb.mxu3 %v749_v34  ;;  %v814_v0 = vld [vmem:[#allocation8 + $0x70] sm:$0xf]  ;;  %v871_v1 = vor.u32 %v927_v60, %v870_v59  ;;  %v913_v2 = vld [vmem:[#allocation8 + $0x74] sm:$0xf0]  ;;  %v912_v3 = vld [vmem:[#allocation8 + $0x74] sm:$0xf]  ;;  %v875_v5 = vor.u32 %v926_v62, %v872_v63 }
  0x22   :  { %v816_v4 = vld [vmem:[#allocation8 + $0x78] sm:$0xf0]  ;;  %v815_v6 = vor.u32 %v913_v2, %v814_v0  ;;  %v862_v8 = vld [vmem:[#allocation8 + $0xd0] sm:$0xf]  ;;  %v925_v9 = vld [vmem:[#allocation8 + $0xd4] sm:$0xf0] }
  0x23   :  { %v297_v35 = vld [vmem:[#allocation1 + $0x9] sm:$0xff]  ;;  %v296_v42 = vld [vmem:[#allocation1] sm:$0xff]  ;;  %v819_v7 = vor.u32 %v912_v3, %v816_v4  ;;  %v909_v32 = vld [vmem:[#allocation8 + $0x54] sm:$0xf0] }
  0x24   :  { %201 = vmatpush.bf16.msra.mxu1 %v886_v10  ;;  %v305_v36 = vsel %vm302_vm5, %v297_v35, 0  ;;  %v303_v45 = vsel %vm302_vm5, %v296_v42, 0  ;;  %v924_v10 = vld [vmem:[#allocation8 + $0xd4] sm:$0xf]  ;;  %v856_v29 = vld [vmem:[#allocation8 + $0xc8] sm:$0xf0] }
  0x25   :  { %328 = vmatpush.bf16.msrb.mxu2 %v305_v36  ;;  %314 = vmatpush.bf16.msrb.mxu0 %v303_v45  ;;  %v798_v31 = vld [vmem:[#allocation8 + $0x50] sm:$0xf]  ;;  %v908_v33 = vld [vmem:[#allocation8 + $0x54] sm:$0xf]  ;;  %v800_v35 = vld [vmem:[#allocation8 + $0x58] sm:$0xf0] }
  0x26   :  { %365 = vmatpush.bf16.msrb.mxu3 %v741_v46  ;;  %v799_v34 = vor.u32 %v909_v32, %v798_v31  ;;  %v803_v36 = vor.u32 %v908_v33, %v800_v35  ;;  %v790_v43 = vld [vmem:[#allocation8 + $0x40] sm:$0xf]  ;;  %v907_v44 = vld [vmem:[#allocation8 + $0x44] sm:$0xf0]  ;;  %v906_v46 = vld [vmem:[#allocation8 + $0x44] sm:$0xf] }
  0x27   :  { %v791_v45 = vor.u32 %v907_v44, %v790_v43  ;;  %v792_v47 = vld [vmem:[#allocation8 + $0x48] sm:$0xf0]  ;;  %v918_v51 = vld [vmem:[#allocation8 + $0xa4] sm:$0xf]  ;;  %v782_v55 = vld [vmem:[#allocation8 + $0x30] sm:$0xf] }
  0x28   :  { %378 = vmatpush.bf16.msrb.mxu1 %v753_v50  ;;  %v795_v48 = vor.u32 %v906_v46, %v792_v47  ;;  %v919_v50 = vld [vmem:[#allocation8 + $0xa4] sm:$0xf0]  ;;  %v905_v56 = vld [vmem:[#allocation8 + $0x34] sm:$0xf0]  ;;  %v784_v59 = vld [vmem:[#allocation8 + $0x38] sm:$0xf0] }
  0x29   :  { %600 = vmatpush.bf16.msra.mxu0 %v815_v6  ;;  %v783_v58 = vor.u32 %v905_v56, %v782_v55  ;;  %v917_v62 = vld [vmem:[#allocation8 + $0x94] sm:$0xf0]  ;;  %v916_v0 = vld [vmem:[#allocation8 + $0x94] sm:$0xf]  ;;  %v774_v3 = vld [vmem:[#allocation8 + $0x20] sm:$0xf] }
  0x2a   :  { %v903_v4 = vld [vmem:[#allocation8 + $0x24] sm:$0xf0] }
  0x2b   :  { %v775_v6 = vor.u32 %v903_v4, %v774_v3 }
  0x2c   :  { %379 = vmatpush.bf16.msrb.mxu1 %v745_v53  ;;  %v840_v53 = vld [vmem:[#allocation8 + $0xa8] sm:$0xf0] }
  0x2d   :  { %v843_v54 = vor.u32 %v918_v51, %v840_v53 }
  0x2e   :  { %736 = vmatmul.msk.bf16.vlgmr.msrb.gmra.mxu0 %vm298_vm6, %v885_v49 }
  0x9b   :  { %v146_v11 = vpop.f32.mrf.mxu0 }
  0x9c   :  { %v147_v13 = vadd.f32 %v939_v12, %v146_v11  ;;  %v864_v11 = vld [vmem:[#allocation8 + $0xd8] sm:$0xf0] }
  0x9d   :  { %v867_v19 = vor.u32 %v924_v10, %v864_v11  ;;  %v915_v10 = vld [vmem:[#allocation8 + $0x84] sm:$0xf0]  ;;  %v914_v11 = vld [vmem:[#allocation8 + $0x84] sm:$0xf] }
  0x9e   :  { %v151_v16 = vmax.f32 %v147_v13, 0.0  ;;  %v911_v13 = vld [vmem:[#allocation8 + $0x64] sm:$0xf0] }
  0xa3   :  { %v148_v14 = vpop.f32.mrf.mxu0 }
  0xa4   :  { %v149_v15 = vadd.f32 %v939_v12, %v148_v14  ;;  %v806_v12 = vld [vmem:[#allocation8 + $0x60] sm:$0xf] }
  0xa5   :  { %v807_v14 = vor.u32 %v911_v13, %v806_v12  ;;  %v824_v13 = vld [vmem:[#allocation8 + $0x88] sm:$0xf0] }
  0xa6   :  { %v152_v17 = vmax.f32 %v149_v15, 0.0  ;;  %v910_v15 = vld [vmem:[#allocation8 + $0x64] sm:$0xf] }
  0xa7   :  { %601 = vmatpush.bf16.msra.mxu0 %v807_v14  ;;  %v827_v14 = vor.u32 %v914_v11, %v824_v13 }
  0xa8   :  { %v153_v18 = vpack.c.bf16 %v152_v17, %v151_v16  ;;  %v808_v16 = vld [vmem:[#allocation8 + $0x68] sm:$0xf0]  ;;  %v863_v17 = vor.u32 %v925_v9, %v862_v8  ;;  %v822_v9 = vld [vmem:[#allocation8 + $0x80] sm:$0xf] }
  0xa9   :  { %v823_v12 = vor.u32 %v915_v10, %v822_v9 }
  0xaa   :  { %713 = vmatmul.msk.bf16.vlgmr.msra.gmra.mxu1 %vm190_vm3, %v153_v18  ;;  %v811_v18 = vor.u32 %v910_v15, %v808_v16  ;;  %v766_v15 = vld [vmem:[#allocation8 + $0x10] sm:$0xf]  ;;  %v901_v16 = vld [vmem:[#allocation8 + $0x14] sm:$0xf0] }
  0xab   :  { %642 = vmatpush.bf16.msra.mxu1 %v883_v61  ;;  %602 = vmatpush.bf16.msra.mxu0 %v799_v34  ;;  %v830_v61 = vld [vmem:[#allocation8 + $0x90] sm:$0xf] }
  0xac   :  { %v831_v63 = vor.u32 %v917_v62, %v830_v61 }
  0xaf   :  { %643 = vmatpush.bf16.msra.mxu1 %v875_v5  ;;  %603 = vmatpush.bf16.msra.mxu0 %v791_v45  ;;  %v902_v5 = vld [vmem:[#allocation8 + $0x24] sm:$0xf] }
  0xb3   :  { %644 = vmatpush.bf16.msra.mxu1 %v867_v19  ;;  %604 = vmatpush.bf16.msra.mxu0 %v783_v58  ;;  %v768_v19 = vld [vmem:[#allocation8 + $0x18] sm:$0xf0] }
  0xb7   :  { %605 = vmatpush.bf16.msra.mxu0 %v775_v6 }
 0x127   :  { %v203_v21 = vpop.f32.mrf.mxu1 }
 0x128   :  { %v204_v23 = vadd.f32 %v940_v22, %v203_v21 }
 0x12a   :  { %v208_v26 = vmax.f32 %v204_v23, 0.0 }
 0x12f   :  { %v205_v24 = vpop.f32.mrf.mxu1 }
 0x130   :  { %v206_v25 = vadd.f32 %v940_v22, %v205_v24 }
 0x132   :  { %v209_v27 = vmax.f32 %v206_v25, 0.0  ;;  %v854_v25 = vld [vmem:[#allocation8 + $0xc0] sm:$0xf] }
 0x134   :  { %v210_v28 = vpack.c.bf16 %v209_v27, %v208_v26  ;;  %v923_v26 = vld [vmem:[#allocation8 + $0xc4] sm:$0xf0]  ;;  %v922_v27 = vld [vmem:[#allocation8 + $0xc4] sm:$0xf] }
 0x135   :  { %v859_v30 = vor.u32 %v922_v27, %v856_v29  ;;  %v386_v29 = vld [vmem:[%s1231_s10] sm:$0x3] }
 0x136   :  { %722 = vmatmul.msk.bf16.vlgmr.msra.gmra.mxu2 %vm227_vm4, %v210_v28  ;;  %v855_v28 = vor.u32 %v923_v26, %v854_v25  ;;  %v760_v25 = vld [vmem:[#allocation8 + $0x8] sm:$0xf0]  ;;  %v389_v32 = vperm.slane %v386_v29, 1 }
 0x137   :  { %614 = vmatpush.bf16.msra.mxu2 %v879_v57  ;;  %645 = vmatpush.bf16.msra.mxu1 %v859_v30  ;;  %v904_v57 = vld [vmem:[#allocation8 + $0x34] sm:$0xf]  ;;  %v316_v30 = vpop.f32.mrf.mxu0 }
 0x138   :  { %v787_v60 = vor.u32 %v904_v57, %v784_v59  ;;  %v660_v59 = vld [vmem:[%s1234_s13] sm:$0x3] }
 0x139   :  { %v663_v4 = vperm.slane %v660_v59, 1 }
 0x13b   :  { %615 = vmatpush.bf16.msra.mxu2 %v871_v1  ;;  %v832_v1 = vld [vmem:[#allocation8 + $0x98] sm:$0xf0] }
 0x13c   :  { %v835_v2 = vor.u32 %v916_v0, %v832_v1  ;;  %v662_v0 = vperm.slane %v660_v59, 0 }
 0x13f   :  { %616 = vmatpush.bf16.msra.mxu2 %v863_v17  ;;  %v900_v17 = vld [vmem:[#allocation8 + $0x14] sm:$0xf]  ;;  %v318_v43 = vpop.f32.mrf.mxu0 }
 0x143   :  { %617 = vmatpush.bf16.msra.mxu2 %v855_v28 }
 0x146   :  { %737 = vmatmul.msk.bf16.vlgmr.msrb.gmra.mxu2 %vm298_vm6, %v885_v49  ;;  %v838_v49 = vld [vmem:[#allocation8 + $0xa0] sm:$0xf] }
 0x147   :  { %v839_v52 = vor.u32 %v919_v50, %v838_v49 }
 0x1b9   :  { %v240_v37 = vpop.f32.mrf.mxu2 }
 0x1ba   :  { %v245_v39 = vmax.f32 %v240_v37, 0.0  ;;  %v846_v37 = vld [vmem:[#allocation8 + $0xb0] sm:$0xf] }
 0x1c1   :  { %v242_v38 = vpop.f32.mrf.mxu2 }
 0x1c2   :  { %v246_v40 = vmax.f32 %v242_v38, 0.0  ;;  %v921_v38 = vld [vmem:[#allocation8 + $0xb4] sm:$0xf0] }
 0x1c4   :  { %v247_v41 = vpack.c.bf16 %v246_v40, %v245_v39  ;;  %v920_v39 = vld [vmem:[#allocation8 + $0xb4] sm:$0xf]  ;;  %v847_v40 = vor.u32 %v921_v38, %v846_v37 }
 0x1c6   :  { %731 = vmatmul.msk.bf16.vlgmr.msra.gmra.mxu3 %vm227_vm4, %v247_v41  ;;  %v848_v41 = vld [vmem:[#allocation8 + $0xb8] sm:$0xf0]  ;;  %618 = vmatpush.bf16.msra.mxu2 %v847_v40 }
 0x1c7   :  { %628 = vmatpush.bf16.msra.mxu3 %v819_v7  ;;  %v851_v42 = vor.u32 %v920_v39, %v848_v41  ;;  %v776_v7 = vld [vmem:[#allocation8 + $0x28] sm:$0xf0]  ;;  %v388_v39 = vperm.slane %v386_v29, 0 }
 0x1c8   :  { %v779_v8 = vor.u32 %v902_v5, %v776_v7 }
 0x1c9   :  { %646 = vmatpush.bf16.msra.mxu1 %v851_v42  ;;  %v330_v27 = vpop.f32.mrf.mxu2 }
 0x1ca   :  { %619 = vmatpush.bf16.msra.mxu2 %v839_v52  ;;  %v434_v52 = vld [vmem:[%s1233_s12] sm:$0x3] }
 0x1cb   :  { %629 = vmatpush.bf16.msra.mxu3 %v811_v18  ;;  %v767_v18 = vor.u32 %v901_v16, %v766_v15  ;;  %v436_v53 = vperm.slane %v434_v52, 0  ;;  %v437_v57 = vperm.slane %v434_v52, 1 }
 0x1cd   :  { %647 = vmatpush.bf16.msra.mxu1 %v843_v54  ;;  %606 = vmatpush.bf16.msra.mxu0 %v767_v18 }
 0x1ce   :  { %620 = vmatpush.bf16.msra.mxu2 %v831_v63 }
 0x1cf   :  { %630 = vmatpush.bf16.msra.mxu3 %v803_v36 }
 0x1d1   :  { %648 = vmatpush.bf16.msra.mxu1 %v835_v2  ;;  %v332_v34 = vpop.f32.mrf.mxu2 }
 0x1d2   :  { %621 = vmatpush.bf16.msra.mxu2 %v823_v12 }
 0x1d3   :  { %631 = vmatpush.bf16.msra.mxu3 %v795_v48 }
 0x1d5   :  { %649 = vmatpush.bf16.msra.mxu1 %v827_v14 }
 0x1d7   :  { %632 = vmatpush.bf16.msra.mxu3 %v787_v60 }
 0x1db   :  { %633 = vmatpush.bf16.msra.mxu3 %v779_v8 }
 0x249   :  { %v276_v20 = vpop.f32.mrf.mxu3 }
 0x24a   :  { %v281_v22 = vmax.f32 %v276_v20, 0.0  ;;  %v771_v20 = vor.u32 %v900_v17, %v768_v19 }
 0x24c   :  { %634 = vmatpush.bf16.msra.mxu3 %v771_v20  ;;  %v941_v20 = vld [vmem:[#allocation2] ss:$0 sm:$0xff] }
 0x251   :  { %v278_v21 = vpop.f32.mrf.mxu3 }
 0x252   :  { %v282_v23 = vmax.f32 %v278_v21, 0.0  ;;  %v758_v21 = vld [vmem:[#allocation8] sm:$0xf] }
 0x254   :  { %v283_v24 = vpack.c.bf16 %v282_v23, %v281_v22  ;;  %v899_v22 = vld [vmem:[#allocation8 + $0x4] sm:$0xf0]  ;;  %v898_v23 = vld [vmem:[#allocation8 + $0x4] sm:$0xf] }
 0x255   :  { %v763_v26 = vor.u32 %v898_v23, %v760_v25 }
 0x256   :  { %754 = vmatmul.msk.bf16.vlgmr.msrb.gmra.mxu3 %vm227_vm4, %v283_v24  ;;  %755 = vmatmul.msk.bf16.vlgmr.msrb.gmra.mxu1 %vm227_vm4, %v283_v24  ;;  %v759_v24 = vor.u32 %v899_v22, %v758_v21 }
 0x257   :  { %635 = vmatpush.bf16.msra.mxu3 %v763_v26 }
 0x258   :  { %607 = vmatpush.bf16.msra.mxu0 %v759_v24 }
 0x2d3   :  { %v381_v28 = vpop.f32.mrf.mxu1 }
 0x2d4   :  { %v382_v31 = vadd.f32 %v381_v28, %v330_v27 }
 0x2d6   :  { %v393_v36 = vadd.f32 %v389_v32, %v382_v31 }
 0x2d8   :  { %v397_v41 = vmax.f32 %v393_v36, 0.0 }
 0x2d9   :  { %v367_v33 = vpop.f32.mrf.mxu3 }
 0x2da   :  { %v368_v38 = vadd.f32 %v367_v33, %v316_v30 }
 0x2db   :  { %v383_v35 = vpop.f32.mrf.mxu1 }
 0x2dc   :  { %v384_v37 = vadd.f32 %v383_v35, %v332_v34  ;;  %v392_v45 = vadd.f32 %v388_v39, %v368_v38 }
 0x2de   :  { %v395_v40 = vadd.f32 %v389_v32, %v384_v37  ;;  %v396_v49 = vmax.f32 %v392_v45, 0.0 }
 0x2e0   :  { %v399_v42 = vmax.f32 %v395_v40, 0.0 }
 0x2e1   :  { %v369_v44 = vpop.f32.mrf.mxu3 }
 0x2e2   :  { %v401_v46 = vpack.c.bf16 %v399_v42, %v397_v41  ;;  %v370_v47 = vadd.f32 %v369_v44, %v318_v43 }
 0x2e4   :  { %v394_v48 = vadd.f32 %v388_v39, %v370_v47  ;;  %622 = vmatmul.bf16.vlgmr.msra.gmra.mxu2 %v401_v46  ;;  %650 = vmatmul.bf16.vlgmr.msra.gmra.mxu1 %v401_v46 }
 0x2e6   :  { %v398_v50 = vmax.f32 %v394_v48, 0.0 }
 0x2e8   :  { %v400_v51 = vpack.c.bf16 %v398_v50, %v396_v49 }
 0x2ea   :  { %608 = vmatmul.bf16.vlgmr.msra.gmra.mxu0 %v400_v51  ;;  %636 = vmatmul.bf16.vlgmr.msra.gmra.mxu3 %v400_v51 }
 0x361   :  { %v651_v60 = vpop.f32.mrf.mxu1 }
 0x367   :  { %v609_v54 = vpop.f32.mrf.mxu0  ;;  %v623_v56 = vpop.f32.mrf.mxu2 }
 0x368   :  { %v610_v55 = vadd.f32 %v609_v54, %v436_v53 }
 0x369   :  { %v653_v13 = vpop.f32.mrf.mxu1 }
 0x36a   :  { %v624_v58 = vadd.f32 %v623_v56, %v610_v55 }
 0x36c   :  { %v656_v1 = vmax.f32 %v624_v58, 0.0 }
 0x36d   :  { %v637_v61 = vpop.f32.mrf.mxu3 }
 0x36e   :  { %v638_v62 = vadd.f32 %v637_v61, %v437_v57  ;;  %v666_v8 = vmul.f32 %v662_v0, %v656_v1 }
 0x36f   :  { %v611_v63 = vpop.f32.mrf.mxu0  ;;  %v625_v6 = vpop.f32.mrf.mxu2 }
 0x370   :  { %v652_v2 = vadd.f32 %v651_v60, %v638_v62  ;;  %v612_v3 = vadd.f32 %v611_v63, %v436_v53 }
 0x372   :  { %v657_v5 = vmax.f32 %v652_v2, 0.0  ;;  %v626_v7 = vadd.f32 %v625_v6, %v612_v3 }
 0x374   :  { %v667_v9 = vmul.f32 %v663_v4, %v657_v5  ;;  %v658_v14 = vmax.f32 %v626_v7, 0.0 }
 0x375   :  { %v639_v10 = vpop.f32.mrf.mxu3 }
 0x376   :  { %v640_v11 = vadd.f32 %v639_v10, %v437_v57  ;;  %v670_v12 = vadd.f32 %v667_v9, %v666_v8  ;;  %v668_v17 = vmul.f32 %v662_v0, %v658_v14 }
 0x378   :  { %v654_v15 = vadd.f32 %v653_v13, %v640_v11  ;;  %671 = vadd.xlane.f32.xlu0 %v670_v12 }
 0x37a   :  { %v659_v16 = vmax.f32 %v654_v15, 0.0 }
 0x37c   :  { %v669_v18 = vmul.f32 %v663_v4, %v659_v16 }
 0x37e   :  { %v673_v19 = vadd.f32 %v669_v18, %v668_v17 }
 0x380   :  { %674 = vadd.xlane.f32.xlu0 %v673_v19 }
 0x3eb   :  { %v672_v21 = vpop.xlane.xlu0 %671 }
 0x3ec   :  { %v680_v22 = vadd.f32 %v941_v20, %v672_v21 }
 0x3ee   :  { %683 = vst.msk [vmem:[%s1236_s15] sm:$0xff] %vm682_vm7, %v680_v22 }
 0x3f3   :  { %v675_v23 = vpop.xlane.xlu0 %674 }
 0x3f4   :  { %v681_v24 = vadd.f32 %v941_v20, %v675_v23 }
 0x3f6   :  { %684 = vst.msk [vmem:[%s1236_s15 + $0x8] sm:$0xff] %vm682_vm7, %v681_v24 }
 0x3f7   :  { %689 = vsyncpa [#allocation4], 1 }
 0x3f8   :  { %690 = vsyncpa [#allocation6], 1 }
 0x3f9   :  { %691 = vsyncpa [#allocation9], 1 }

</bundles_post_ra>
